<compile_context>
chip_gen: v6e
topology: v6e:2x2x1
jax: 0.10.0
libtpu: 0.0.40
codegen_flags: <defaults>
</compile_context>

<pallas_src>
import jax
import jax.numpy as jnp
from jax.experimental import pallas as pl
from jax.experimental.pallas import tpu as pltpu


def _pos_enc_kernel(x_ref, pe_ref, o_ref):
    # x_ref:  (TB, TN) tile of x reshaped to (B, S*D)
    # pe_ref: (1,  TN) tile of pe reshaped to (1, S*D); broadcasts over sublanes
    # o_ref:  (TB, TN)
    o_ref[...] = x_ref[...] + pe_ref[...]


def _sublane_align(itemsize):
    # (8, 128) is the hard layout rule for 32-bit; packed dtypes prefer 16
    # (bf16) / 32 (int8, fp8) sublanes so tiles don't fight the packed layout.
    return max(8, 32 // max(int(itemsize), 1))


def _round_down(v, align):
    return max((int(v) // align) * align, align)


def _vmem_budget_and_limit():
    """(per-step live-bytes budget, scoped vmem_limit_bytes) per TPU generation."""
    try:
        cap = int(getattr(pltpu.get_tpu_info(), "vmem_capacity_bytes"))
    except Exception:
        cap = 64 << 20  # conservative: assume v7x (64 MiB per TensorCore)
    if cap <= (64 << 20):        # v7x
        limit = 48 << 20
    else:                        # v5e / v6e (128 MiB physical VMEM)
        limit = 64 << 20
    budget = limit - (16 << 20)  # headroom for compiler scratch / pipeline bufs
    return budget, limit


def _select_tiles(B, N, itemsize, sub, budget):
    """Pick (TB, TN). Prefer contiguous full-row tiles (TN == N)."""

    def live(tb, tn):
        # double-buffered x-in + out tiles, plus the double-buffered (1, tn) pe tile
        return (4 * tb * tn + 2 * tn) * itemsize

    # 1) Full rows, full batch: one contiguous slab per step.
    if live(B, N) <= budget:
        return B, N
    # 2) Full rows, shrink the batch (sublane) tile instead of splitting N.
    max_tb = (budget // itemsize - 2 * N) // (4 * N)
    if max_tb >= sub:
        return min(_round_down(max_tb, sub), B), N
    # 3) N itself is too wide: minimal sublane tile, split the lane axis.
    tb = B if B < sub else sub
    max_tn = (budget // itemsize) // (4 * tb + 2)
    tn = max(_round_down(min(max_tn, N), 128), 128)
    return tb, tn


def _ensure_multistep(B, N, TB, TN, sub, total_bytes):
    """Keep >= 2 parallel grid steps for non-trivial sizes (v7x has 2 TCs)."""
    if total_bytes < (4 << 20):
        return TB, TN
    if pl.cdiv(N, TN) * pl.cdiv(B, TB) >= 2:
        return TB, TN
    if B >= 2 * sub:
        return _round_down(pl.cdiv(B, 2), sub), TN
    if N >= 2 * 128:
        return TB, _round_down(pl.cdiv(N, 2), 128)
    return TB, TN


def positional_encoding_forward(x, pe, *, force_pallas=False):
    """x: (B, S, D), pe: (S, D) -> x + pe[None, :, :] (broadcast over batch)."""
    B, S, D = x.shape
    assert pe.shape == (S, D)

    # Match PyTorch type-promotion: compute and emit in the promoted dtype.
    out_dtype = jnp.result_type(x.dtype, pe.dtype)
    N = S * D
    itemsize = jnp.dtype(out_dtype).itemsize
    total_bytes = B * N * itemsize

    # Small-shape fast path: let XLA fuse the add into the consumer.
    if not force_pallas and total_bytes < (1 << 20):
        return x.astype(out_dtype) + pe.astype(out_dtype)[None, :, :]

    sub = _sublane_align(itemsize)
    budget, vmem_limit = _vmem_budget_and_limit()
    TB, TN = _select_tiles(B, N, itemsize, sub, budget)
    TB, TN = _ensure_multistep(B, N, TB, TN, sub, total_bytes)

    # Lane-dense layout: collapse (S, D) so the last (lane) dim is wide.
    x2 = x.reshape(B, N).astype(out_dtype)
    pe2 = pe.reshape(1, N).astype(out_dtype)

    # N outer, B inner: the pe block index only depends on n, so each pe slab
    # is fetched once per N-slice and reused across all B tiles of that slice.
    grid = (pl.cdiv(N, TN), pl.cdiv(B, TB))

    cost = pl.CostEstimate(
        flops=B * N,
        transcendentals=0,
        bytes_accessed=(2 * B * N + N) * itemsize,
    )

    out2 = pl.pallas_call(
        _pos_enc_kernel,
        out_shape=jax.ShapeDtypeStruct((B, N), out_dtype),
        grid_spec=pltpu.PrefetchScalarGridSpec(
            num_scalar_prefetch=0,
            grid=grid,
            in_specs=[
                pl.BlockSpec((TB, TN), lambda n, b: (b, n)),
                pl.BlockSpec((1, TN), lambda n, b: (0, n)),
            ],
            out_specs=pl.BlockSpec((TB, TN), lambda n, b: (b, n)),
        ),
        compiler_params=pltpu.CompilerParams(
            dimension_semantics=("parallel", "parallel"),
            vmem_limit_bytes=vmem_limit,
        ),
        cost_estimate=cost,
    )(x2, pe2)

    return out2.reshape(B, S, D)


if __name__ == "__main__":
    key = jax.random.PRNGKey(0)
    kx, kpe, kx2 = jax.random.split(key, 3)

    # Module config: first_dim=8 (sequence length), embedding_dimension=32.
    B, S, D = 2, 8, 32
    # Deterministic "parameter" init mirroring torch.rand(first_dim, emb_dim).
    pe = jax.random.uniform(kpe, (S, D), dtype=jnp.float32)
    x = jax.random.normal(kx, (B, S, D), dtype=jnp.float32)

    # 1) Force the Pallas kernel path on the demo shape and check vs. reference.
    out = jax.block_until_ready(positional_encoding_forward(x, pe, force_pallas=True))
    ref = x + pe[None, :, :]
    assert out.shape == (B, S, D)
    assert jnp.allclose(out, ref, atol=1e-6), "pallas path mismatch vs reference"

    # 2) Auto path (tiny shape -> plain-JAX fast path) must match too.
    out_auto = jax.block_until_ready(positional_encoding_forward(x, pe))
    assert jnp.allclose(out_auto, ref, atol=1e-6), "fast path mismatch vs reference"

    # 3) A modestly larger shape to exercise full-row tiling in the kernel.
    B2, S2, D2 = 16, 64, 128
    pe_big = jax.random.uniform(kpe, (S2, D2), dtype=jnp.float32)
    x_big = jax.random.normal(kx2, (B2, S2, D2), dtype=jnp.float32)
    out_big = jax.block_until_ready(
        positional_encoding_forward(x_big, pe_big, force_pallas=True)
    )
    ref_big = x_big + pe_big[None, :, :]
    assert jnp.allclose(out_big, ref_big, atol=1e-6), "large-shape mismatch vs reference"

    print("KERNEL_OK")
</pallas_src>

<mosaic_0001>
module attributes {stable_mosaic.version = 11 : i64} {
  func.func @_pos_enc_kernel(%arg0: i32, %arg1: i32, %arg2: memref<2x256xf32, #tpu.memory_space<vmem>>, %arg3: memref<1x256xf32, #tpu.memory_space<vmem>>, %arg4: memref<2x256xf32, #tpu.memory_space<vmem>>) attributes {dimension_semantics = [#tpu.dimension_semantics<parallel>, #tpu.dimension_semantics<parallel>], iteration_bounds = array<i64: 1, 1>, scalar_prefetch = 0 : i64, scratch_operands = 0 : i64, tpu.core_type = #tpu.core_type<tc>, window_params = [{transform_indices = @transform_0, window_bounds = array<i64: 2, 256>}, {transform_indices = @transform_1, window_bounds = array<i64: 1, 256>}, {transform_indices = @transform_2, window_bounds = array<i64: 2, 256>}]} {
    %c0 = arith.constant 0 : index
    %c0_0 = arith.constant 0 : index
    %0 = vector.load %arg2[%c0, %c0_0] : memref<2x256xf32, #tpu.memory_space<vmem>>, vector<2x256xf32>
    %c0_1 = arith.constant 0 : index
    %c0_2 = arith.constant 0 : index
    %1 = vector.load %arg3[%c0_1, %c0_2] : memref<1x256xf32, #tpu.memory_space<vmem>>, vector<1x256xf32>
    %2 = vector.broadcast %1 : vector<1x256xf32> to vector<2x256xf32>
    %3 = arith.addf %0, %2 : vector<2x256xf32>
    %c0_3 = arith.constant 0 : index
    %c0_4 = arith.constant 0 : index
    %4 = vector.load %arg4[%c0_3, %c0_4] : memref<2x256xf32, #tpu.memory_space<vmem>>, vector<2x256xf32>
    tpu.vector_store %arg4[%c0_3, %c0_4], %3 {strides = array<i32>} : memref<2x256xf32, #tpu.memory_space<vmem>>, vector<2x256xf32>,
    return
  }
  func.func @transform_0(%arg0: i32, %arg1: i32) -> (i32, i32) {
    %c0_i32 = arith.constant 0 : i32
    return %arg1, %arg0 : i32, i32
  }
  func.func @transform_1(%arg0: i32, %arg1: i32) -> (i32, i32) {
    %c0_i32 = arith.constant 0 : i32
    %c0_i32_0 = arith.constant 0 : i32
    return %c0_i32, %arg0 : i32, i32
  }
  func.func @transform_2(%arg0: i32, %arg1: i32) -> (i32, i32) {
    %c0_i32 = arith.constant 0 : i32
    return %arg1, %arg0 : i32, i32
  }
}

</mosaic_0001>

<bundles_post_ra>
// kernel: tpu_custom_call.1
= control target key start
LH: loop header
LB: loop body
LE: loop exit
PB: predicated region body
PF: predicated region fallthrough
CT: control target
= control target key end

     0   :  { %7 = vsyncpa [#allocation3], 0  ;;  %s172_s0 = inlined_call_operand.hbm [shape: f32[2,256], index: 0, kind: input, shape index: {}]   ;;  %s173_s1 = inlined_call_operand.hbm [shape: f32[1,256], index: 1, kind: input, shape index: {}]   ;;  %s174_s2 = inlined_call_operand.hbm [shape: f32[2,256], index: 2, kind: output, shape index: {}]  }
   0x1   :  { %8 = vsyncpa [#allocation6], 0 }
   0x2   :  { %9 = vsyncpa [#allocation4], 0  ;;  %s144_s9 = smov [#allocation2]   ;;  %s145_s11 = smov [#allocation5]  }
   0x3   :  { %s16_s10 = sshll.u32 %s144_s9, 4  ;;  %s26_s12 = sshll.u32 %s145_s11, 4  ;;  %s17_s10 = int_to_ptr.vmem [resolvable:$true] %s16_s10  ;;  %s27_s12 = int_to_ptr.vmem [resolvable:$true] %s26_s12 }
   0x4   :  { %s86_s13 = scalar_lea.vmem %s17_s10, 64  ;;  %p91_p1 = scmp.lt.s32.totalorder %s17_s10, %s17_s10 }
   0x5   :  { %p87_p0 = scmp.ne.s32.totalorder %s17_s10, %s86_s13  ;;  %p92_p2 = scmp.lt.s32.totalorder %s86_s13, %s86_s13 }
   0x7   :  { %p93_p3 = por %p92_p2, %p91_p1 }
   0x9   :  { %p94_p4 = pnand %p93_p3, %p87_p0 }
   0xb   :  { %97 = shalt.err (!%p94_p4)
}
   0xc   :  { %19 = dma.hbm_to_vmem [thread:$0]  %s172_s0, 64, %s17_s10, [#allocation3]  }
   0xd   :  { %s106_s16 = scalar_lea.vmem %s27_s12, 32  ;;  %p111_p6 = scmp.lt.s32.totalorder %s27_s12, %s27_s12 }
   0xe   :  { %p107_p5 = scmp.ne.s32.totalorder %s27_s12, %s106_s16  ;;  %p112_p7 = scmp.lt.s32.totalorder %s106_s16, %s106_s16 }
  0x10   :  { %p113_p8 = por %p112_p7, %p111_p6 }
  0x12   :  { %p114_p9 = pnand %p113_p8, %p107_p5 }
  0x14   :  { %117 = shalt.err (!%p114_p9)
}
  0x15   :  { %29 = dma.hbm_to_vmem [thread:$0]  %s173_s1, 32, %s27_s12, [#allocation6]  }
  0x16   :  { %138 = dma.done.wait [#allocation3], 64  }
  0x17   :  { %139 = vsyncadd [#allocation3], 4294967232 }
  0x18   :  { %140 = dma.done.wait [#allocation6], 32  }
  0x19   :  { %141 = vsyncadd [#allocation6], 4294967264  ;;  %v39_v0 = vlaneseq  ;;  %v146_v1 = vmov 1983009808   ;;  %v37_v7 = vld [vmem:[#allocation5] sm:$0x3] }
  0x1a   :  { %v49_v2 = vunpack.c.l.s4 %v146_v1  ;;  %v36_v12 = vld [vmem:[#allocation2] sm:$0xf]  ;;  %s147_s0 = smov [#allocation7]  }
  0x1b   :  { %v40_v3 = vshrl.u32 %v39_v0, 7  ;;  %s64_s19 = sshll.u32 %s147_s0, 4  ;;  %s65_s19 = int_to_ptr.vmem [resolvable:$true] %s64_s19 }
  0x1c   :  { %v50_v6 = vunpack.c.0.s8 %v49_v2  ;;  %s118_s1 = scalar_lea.vmem %s65_s19, 64  ;;  %p123_p11 = scmp.lt.s32.totalorder %s65_s19, %s65_s19 }
  0x1d   :  { %v41_v4 = vsub.s32 0, %v40_v3  ;;  %v45_v5 = vsub.s32 1, %v40_v3  ;;  %p119_p10 = scmp.ne.s32.totalorder %s65_s19, %s118_s1  ;;  %p124_p12 = scmp.lt.s32.totalorder %s118_s1, %s118_s1 }
  0x1e   :  { %v53_v10 = vsub.s32 %v50_v6, %v40_v3 }
  0x1f   :  { %v42_v8 = vrot.slane %v37_v7, %v41_v4  ;;  %v46_v9 = vrot.slane %v37_v7, %v45_v5  ;;  %p125_p13 = por %p124_p12, %p123_p11 }
  0x21   :  { %v47_v11 = vcombine.low %v42_v8, %v46_v9  ;;  %p126_p0 = pnand %p125_p13, %p119_p10 }
  0x23   :  { %v54_v13 = vrot.slane %v47_v11, %v53_v10 }
  0x25   :  { %v56_v14 = vadd.f32 %v54_v13, %v36_v12 }
  0x27   :  { %57 = vst [vmem:[#allocation7] sm:$0xf] %v56_v14 }
  0x28   :  { %129 = shalt.err (!%p126_p0)
}
  0x29   :  { %67 = dma.vmem_to_hbm [thread:$0]  %s65_s19, 64, %s174_s2, [#allocation4]  }
  0x2a   :  { %142 = dma.done.wait [#allocation4], 64  }
  0x2b   :  { %143 = vsyncadd [#allocation4], 4294967232 }
  0x2c   :  { %71 = vsyncpa [#allocation3], 1 }
  0x2d   :  { %72 = vsyncpa [#allocation6], 1 }
  0x2e   :  { %73 = vsyncpa [#allocation4], 1 }

</bundles_post_ra>
